<compile_context>
chip_gen: v5e
topology: v5e:2x2
jax: 0.10.0
libtpu: 0.0.40
codegen_flags: <defaults>
</compile_context>

<pallas_src>
import functools

import jax
import jax.numpy as jnp
from jax.experimental import pallas as pl
from jax.experimental.pallas import tpu as pltpu


# ----------------------------- tiling heuristics -----------------------------

def _cdiv(a, b):
    return -(-a // b)


def _round_up(v, m):
    return ((v + m - 1) // m) * m


def _detect_vmem_budget():
    """(tile_budget_bytes, vmem_limit_bytes) for the local TPU generation."""
    cap = None
    try:
        cap = int(pltpu.get_tpu_info().vmem_capacity_bytes)
    except Exception:
        cap = None
    if cap is not None and cap >= 96 * 1024 * 1024:
        # v5e / v6e: 128 MiB VMEM -> much bigger tiles, fewer grid steps.
        return 80 * 1024 * 1024, 100 * 1024 * 1024
    # v7x (64 MiB VMEM) or unknown: stay conservative.
    return 28 * 1024 * 1024, 48 * 1024 * 1024


_TILE_BUDGET_BYTES, _VMEM_LIMIT_BYTES = _detect_vmem_budget()


def _sublane_quantum(itemsize):
    # f32 -> 8, bf16 -> 16, int8/fp8 -> 32 (sub-32-bit dtypes pack on sublanes).
    return max(8, 32 // max(1, itemsize))


def _choose_rows_tiles(rows, d, x_itemsize, w_itemsize):
    """Row tile tm and tx.T output-column tile tn for the channel-last path."""
    q = _sublane_quantum(x_itemsize)
    # Keep tn = D unless the (double-buffered) weight slab would eat more than
    # half the budget (very large D only). tn tiles OUTPUT columns only; the
    # contraction dim D is never tiled.
    tn = d
    while tn > 512 and 2 * d * tn * w_itemsize > _TILE_BUDGET_BYTES // 2:
        tn = max(512, _round_up(tn // 2, 128))
    fixed = 2 * d * tn * w_itemsize + 2 * tn * 4           # tx.T + f32 bias buffers
    per_row = 2 * (d + tn) * x_itemsize                    # x + out tiles, 2x buffered
    remaining = max(per_row, _TILE_BUDGET_BYTES - fixed)
    tm = remaining // per_row
    tm = max(q, min(4096, (tm // q) * q))
    tm = min(tm, _round_up(rows, q))
    # Prefer >=4 (at least 2) row blocks so both v7x TensorCores get work and
    # DMA/compute overlap exists, without shrinking tiles below ~256 rows.
    for blocks in (4, 2):
        cand = _round_up(_cdiv(rows, blocks), q)
        if cand >= 256:
            tm = min(tm, cand)
            break
    return tm, tn


def _choose_nchw_tiles(n, hw, c, x_itemsize, w_itemsize):
    """Output-channel tile t_co and lane (H*W) tile thw for the NCHW path."""
    q = _sublane_quantum(min(x_itemsize, w_itemsize))
    # Output-channel tile of tx: keep full C unless the (double-buffered) tx
    # slab would eat more than half the budget (very large C). t_co tiles
    # OUTPUT channels only; the contraction dim C is never tiled.
    t_co = c
    while t_co > 256 and 2 * t_co * c * w_itemsize > _TILE_BUDGET_BYTES // 2:
        t_co = max(256, _round_up(t_co // 2, q))
    fixed = 2 * t_co * c * w_itemsize + 2 * t_co * 4       # tx + f32 bias buffers
    per_lane = 2 * (c + t_co) * x_itemsize                 # x + out tiles, 2x buffered
    remaining = max(per_lane, _TILE_BUDGET_BYTES - fixed)
    thw = remaining // per_lane
    thw = max(128, (thw // 128) * 128)
    thw = min(thw, _round_up(hw, 128))
    # Prefer >=4 parallel blocks across (n, hw) (>=2 for v7x's two TCs),
    # splitting hw when N alone is too small, but keep lanes >= 512.
    want_hw_blocks = _cdiv(4, max(1, n))
    if want_hw_blocks > 1:
        cand = _round_up(_cdiv(hw, want_hw_blocks), 128)
        if cand >= 512:
            thw = min(thw, cand)
    return t_co, thw


# --------------------------------- kernels -----------------------------------

def _rows_kernel(x_ref, txt_ref, bias_ref, o_ref):
    # x_ref: (tm, D); txt_ref: (D, tn) column block of tx.T; bias_ref: (1, tn) f32.
    # D (contraction) is always a full block -> masked partial tm/tn blocks are safe.
    x = x_ref[...]
    w = txt_ref[...]
    if x.dtype != w.dtype:
        x = x.astype(w.dtype)           # optional bf16 matmul path
    acc = jnp.dot(x, w, preferred_element_type=jnp.float32)
    o_ref[...] = (acc + bias_ref[...]).astype(o_ref.dtype)


def _nchw_kernel(x_ref, tx_ref, bias_ref, o_ref):
    # x_ref: (1, C, thw); tx_ref: (t_co, C); bias_ref: (t_co, 1) f32;
    # o_ref: (1, t_co, thw). C (contraction) is always a full block.
    x = x_ref[0]
    w = tx_ref[...]
    if x.dtype != w.dtype:
        x = x.astype(w.dtype)
    y = jnp.dot(w, x, preferred_element_type=jnp.float32)
    o_ref[0] = (y + bias_ref[...]).astype(o_ref.dtype)


# ------------------------------- jitted paths ---------------------------------

@functools.partial(jax.jit, static_argnames=("tm", "tn", "col_major"))
def _featnorm_rows(x, tx_t, bias_row, *, tm, tn, col_major):
    orig_shape = x.shape
    d = x.shape[-1]
    x2d = x.reshape(-1, d)
    rows = x2d.shape[0]
    i_blocks = _cdiv(rows, tm)
    j_blocks = _cdiv(d, tn)
    if col_major:
        # Weight-column block outer, row block inner: the tx.T slab streams
        # once total; x is re-streamed j_blocks times. Selected only when this
        # direction has less HBM traffic (large D with tn < D).
        grid = (j_blocks, i_blocks)
        x_map = lambda j, i: (i, 0)
        w_map = lambda j, i: (0, j)
        b_map = lambda j, i: (0, j)
        o_map = lambda j, i: (i, j)
    else:
        grid = (i_blocks, j_blocks)
        x_map = lambda i, j: (i, 0)
        w_map = lambda i, j: (0, j)
        b_map = lambda i, j: (0, j)
        o_map = lambda i, j: (i, j)
    y2d = pl.pallas_call(
        _rows_kernel,
        out_shape=jax.ShapeDtypeStruct((rows, d), x.dtype),
        grid_spec=pltpu.PrefetchScalarGridSpec(
            num_scalar_prefetch=0,
            grid=grid,
            in_specs=[
                pl.BlockSpec((tm, d), x_map),
                pl.BlockSpec((d, tn), w_map),
                pl.BlockSpec((1, tn), b_map),
            ],
            out_specs=pl.BlockSpec((tm, tn), o_map),
        ),
        compiler_params=pltpu.CompilerParams(
            dimension_semantics=("parallel", "parallel"),
            vmem_limit_bytes=_VMEM_LIMIT_BYTES,
        ),
    )(x2d, tx_t, bias_row)
    return y2d.reshape(orig_shape)


@functools.partial(jax.jit, static_argnames=("t_co", "thw"))
def _featnorm_nchw(x, tx, bias_col, *, t_co, thw):
    n, c, h, w = x.shape
    hw = h * w
    x3 = x.reshape(n, c, hw)                 # free reshape (contiguous HW)
    grid = (n, _cdiv(c, t_co), _cdiv(hw, thw))
    y3 = pl.pallas_call(
        _nchw_kernel,
        out_shape=jax.ShapeDtypeStruct((n, c, hw), x.dtype),
        grid_spec=pltpu.PrefetchScalarGridSpec(
            num_scalar_prefetch=0,
            grid=grid,
            in_specs=[
                pl.BlockSpec((1, c, thw), lambda ni, co, hi: (ni, 0, hi)),
                pl.BlockSpec((t_co, c), lambda ni, co, hi: (co, 0)),
                pl.BlockSpec((t_co, 1), lambda ni, co, hi: (co, 0)),
            ],
            out_specs=pl.BlockSpec((1, t_co, thw), lambda ni, co, hi: (ni, co, hi)),
        ),
        compiler_params=pltpu.CompilerParams(
            dimension_semantics=("parallel", "parallel", "parallel"),
            vmem_limit_bytes=_VMEM_LIMIT_BYTES,
        ),
    )(x3, tx, bias_col)
    return y3.reshape(n, c, h, w)


# --------------------------------- module ------------------------------------

class FeatureNormalizer:
    """JAX/Pallas equivalent of the PyTorch FeatureNormalizer module."""

    def __init__(self, embed_dim: int, dtype=jnp.float32, mean=None, tx=None,
                 matmul_dtype=None):
        self.embed_dim = embed_dim
        self.dtype = dtype
        self.mean = (jnp.zeros((embed_dim,), dtype) if mean is None
                     else jnp.asarray(mean, dtype))
        self.tx = (jnp.eye(embed_dim, dtype=dtype) if tx is None
                   else jnp.asarray(tx, dtype))
        # Fold the mean into a bias:  (x - mean) @ tx.T == x @ tx.T + (-(tx @ mean)).
        # The bias is computed and kept in f32 regardless of module dtype; it is
        # added onto the f32 matmul accumulator inside the kernels.
        bias = -(self.tx.astype(jnp.float32) @ self.mean.astype(jnp.float32))
        self.bias_row = bias.reshape(1, embed_dim)        # channel-last path
        self.bias_col = bias.reshape(embed_dim, 1)        # NCHW path
        # Optional reduced-precision weights for the MXU (x tiles are cast to
        # this dtype inside the kernels). Off by default: numerics change.
        w_dtype = dtype if matmul_dtype is None else matmul_dtype
        self.tx_w = jnp.asarray(self.tx, w_dtype)         # NCHW weight
        self.tx_t = jnp.asarray(self.tx.T, w_dtype)       # rows-path weight (tx.T)
        self._w_itemsize = jnp.dtype(w_dtype).itemsize

    def __call__(self, x):
        d = self.embed_dim
        x_itemsize = jnp.dtype(x.dtype).itemsize
        if x.ndim <= 3:
            if x.shape[-1] != d:
                raise ValueError(f"Expected last dim {d}, got {x.shape}")
            if x.size == 0:
                return jnp.zeros(x.shape, x.dtype)
            rows = 1
            for s in x.shape[:-1]:
                rows *= s
            rows = max(rows, 1)
            tm, tn = _choose_rows_tiles(rows, d, x_itemsize, self._w_itemsize)
            i_blocks, j_blocks = _cdiv(rows, tm), _cdiv(d, tn)
            # Flip the grid only when tn < D and it reduces HBM traffic:
            # weight re-fetch ~(I-1)*D^2  vs  x re-fetch ~(J-1)*rows*D.
            col_major = j_blocks > 1 and (i_blocks - 1) * d > (j_blocks - 1) * rows
            return _featnorm_rows(x, self.tx_t, self.bias_row,
                                  tm=tm, tn=tn, col_major=col_major)
        elif x.ndim == 4:
            n, c, h, w = x.shape
            if c != d:
                raise ValueError(f"Expected {d} channels, got {c}")
            if x.size == 0:
                return jnp.zeros(x.shape, x.dtype)
            t_co, thw = _choose_nchw_tiles(n, h * w, c, x_itemsize, self._w_itemsize)
            return _featnorm_nchw(x, self.tx_w, self.bias_col, t_co=t_co, thw=thw)
        else:
            raise ValueError(f"Unsupported input dimension: {x.ndim}, shape: {x.shape}")


# -------------------------------- reference ----------------------------------

def _reference(x, mean, tx):
    """Pure-JAX reference mirroring the PyTorch _run_kernel."""
    if x.ndim <= 3:
        return (x - mean) @ tx.T
    xm = x - mean.reshape(1, -1, 1, 1)
    return jnp.einsum("nchw,oc->nohw", xm, tx)


if __name__ == "__main__":
    key = jax.random.PRNGKey(0)
    k1, k2, k3, k4 = jax.random.split(key, 4)

    embed_dim = 32
    mean = jax.random.normal(k1, (embed_dim,), jnp.float32) * 0.1
    tx = (jnp.eye(embed_dim, dtype=jnp.float32)
          + 0.05 * jax.random.normal(k2, (embed_dim, embed_dim), jnp.float32))

    norm = FeatureNormalizer(embed_dim, mean=mean, tx=tx)

    # 4D NCHW case (1x1-conv path)
    x4 = jax.random.normal(k3, (2, embed_dim, 8, 8), jnp.float32)
    y4 = jax.block_until_ready(norm(x4))
    ref4 = _reference(x4, mean, tx)
    assert y4.shape == x4.shape
    assert jnp.allclose(y4, ref4, atol=1e-4, rtol=1e-4), "4D mismatch"

    # 3D (batch, seq, dim) case
    x3 = jax.random.normal(k4, (2, 8, embed_dim), jnp.float32)
    y3 = jax.block_until_ready(norm(x3))
    ref3 = _reference(x3, mean, tx)
    assert y3.shape == x3.shape
    assert jnp.allclose(y3, ref3, atol=1e-4, rtol=1e-4), "3D mismatch"

    print("KERNEL_OK")
</pallas_src>

<mosaic_0001>
module attributes {stable_mosaic.version = 11 : i64} {
  func.func @_nchw_kernel(%arg0: i32, %arg1: i32, %arg2: i32, %arg3: memref<1x32x128xf32, #tpu.memory_space<vmem>>, %arg4: memref<32x32xf32, #tpu.memory_space<vmem>>, %arg5: memref<32x1xf32, #tpu.memory_space<vmem>>, %arg6: memref<1x32x128xf32, #tpu.memory_space<vmem>>) attributes {dimension_semantics = [#tpu.dimension_semantics<parallel>, #tpu.dimension_semantics<parallel>, #tpu.dimension_semantics<parallel>], iteration_bounds = array<i64: 2, 1, 1>, scalar_prefetch = 0 : i64, scratch_operands = 0 : i64, tpu.core_type = #tpu.core_type<tc>, window_params = [{transform_indices = @transform_0, window_bounds = array<i64: 1, 32, 128>}, {transform_indices = @transform_1, window_bounds = array<i64: 32, 32>}, {transform_indices = @transform_2, window_bounds = array<i64: 32, 1>}, {transform_indices = @transform_3, window_bounds = array<i64: 1, 32, 128>}]} {
    %c0 = arith.constant 0 : index
    %c0_0 = arith.constant 0 : index
    %c0_1 = arith.constant 0 : index
    %0 = vector.load %arg3[%c0, %c0_0, %c0_1] : memref<1x32x128xf32, #tpu.memory_space<vmem>>, vector<1x32x128xf32>
    %1 = vector.shape_cast %0 : vector<1x32x128xf32> to vector<32x128xf32>
    %c0_2 = arith.constant 0 : index
    %c0_3 = arith.constant 0 : index
    %2 = vector.load %arg4[%c0_2, %c0_3] : memref<32x32xf32, #tpu.memory_space<vmem>>, vector<32x32xf32>
    %cst = arith.constant dense<0.000000e+00> : vector<32x128xf32>
    %3 = tpu.matmul %2, %1, %cst {dimension_numbers = #tpu.dot_dimension_numbers<[1], [0], [0], [1], [0, 0, 1, 1], [], []>} : vector<32x32xf32>, vector<32x128xf32>, vector<32x128xf32> -> vector<32x128xf32>
    %c0_4 = arith.constant 0 : index
    %c0_5 = arith.constant 0 : index
    %4 = vector.load %arg5[%c0_4, %c0_5] : memref<32x1xf32, #tpu.memory_space<vmem>>, vector<32x1xf32>
    %5 = vector.broadcast %4 : vector<32x1xf32> to vector<32x128xf32>
    %6 = arith.addf %3, %5 : vector<32x128xf32>
    %c0_6 = arith.constant 0 : index
    %c0_7 = arith.constant 0 : index
    %c0_8 = arith.constant 0 : index
    %7 = vector.load %arg6[%c0_6, %c0_7, %c0_8] : memref<1x32x128xf32, #tpu.memory_space<vmem>>, vector<1x32x128xf32>
    %8 = vector.shape_cast %7 : vector<1x32x128xf32> to vector<32x128xf32>
    %9 = vector.shape_cast %6 : vector<32x128xf32> to vector<1x32x128xf32>
    tpu.vector_store %arg6[%c0_6, %c0_7, %c0_8], %9 {strides = array<i32>} : memref<1x32x128xf32, #tpu.memory_space<vmem>>, vector<1x32x128xf32>,
    return
  }
  func.func @transform_0(%arg0: i32, %arg1: i32, %arg2: i32) -> (i32, i32, i32) {
    %c0_i32 = arith.constant 0 : i32
    %c0_i32_0 = arith.constant 0 : i32
    return %arg0, %c0_i32, %arg2 : i32, i32, i32
  }
  func.func @transform_1(%arg0: i32, %arg1: i32, %arg2: i32) -> (i32, i32) {
    %c0_i32 = arith.constant 0 : i32
    %c0_i32_0 = arith.constant 0 : i32
    return %arg1, %c0_i32 : i32, i32
  }
  func.func @transform_2(%arg0: i32, %arg1: i32, %arg2: i32) -> (i32, i32) {
    %c0_i32 = arith.constant 0 : i32
    %c0_i32_0 = arith.constant 0 : i32
    return %arg1, %c0_i32 : i32, i32
  }
  func.func @transform_3(%arg0: i32, %arg1: i32, %arg2: i32) -> (i32, i32, i32) {
    %c0_i32 = arith.constant 0 : i32
    return %arg0, %arg1, %arg2 : i32, i32, i32
  }
}

</mosaic_0001>

<bundles_post_ra>
// kernel: _featnorm_nchw.1
= control target key start
LH: loop header
LB: loop body
LE: loop exit
PB: predicated region body
PF: predicated region fallthrough
CT: control target
= control target key end

     0   :  { %s575_s12 = smov 0   ;;  %s577_s13 = smov 0   ;;  %s639_s0 = inlined_call_operand.vmem [shape: f32[2,32,64], index: 0, kind: input, shape index: {}]   ;;  %s640_s1 = inlined_call_operand.vmem [shape: f32[32,32], index: 1, kind: input, shape index: {}]   ;;  %s641_s2 = inlined_call_operand.vmem [shape: f32[32,1], index: 2, kind: input, shape index: {}]   ;;  %s642_s3 = inlined_call_operand.vmem [shape: f32[2,32,64], index: 3, kind: output, shape index: {}]  }
   0x1   :  { %s579_s14 = smov 0  }
   0x2 LB: > { %s32_s15 = sadd.s32 1, %s548_s13  ;;  %p478_p0 = scmp.ge.s32.totalorder %s552_s14, 1  ;;  %s552_s14 = sphi %s579_s14, %s13_s14   ;;  %s548_s13 = sphi %s577_s13, %s644_s13   ;;  %s544_s12 = sphi %s575_s12, %s643_s12  }
   0x3   : > { %p34_p1 = scmp.ge.s32.totalorder %s32_s15, 2  ;;  %p187_p2 = scmp.lt.s32.totalorder %s552_s14, 3 }
   0x5   : > { %s646_s15 = smov (%p34_p1, %s32_s15), 0  ;;  %p188_p3 = pnand %p478_p0, %p187_p2 }
   0x6   : > { %p231_p4 = scmp.lt.s32.totalorder (!%p188_p3), %s544_s12, 1 }
   0x7   : > { %191 = sbr.rel (%p188_p3) target bundleno = 161 (0xa1), region = 32 }
   0xc   : > { %v554_v0 = vmov 0   ;;  %v274_v1 = vld [vmem:[%s641_s2 + $0x10] sm:$0xff]  ;;  %v272_v2 = vld [vmem:[%s641_s2] sm:$0xff]  ;;  %s648_s12 = smov (!%p231_p4, %s544_s12), 1  ;;  %vm296_vm0 = vcmask 261120   ;;  %v269_v8 = vld [vmem:[%s640_s1 + $0x8] sm:$0xff] }
   0xd   : > { %529 = vset.pattern.permute.xlu1 %v554_v0  ;;  %528 = vset.pattern.permute.xlu0 %v554_v0  ;;  %s489_s20 = sshll.u32 %s648_s12, 5  ;;  %v268_v7 = vld [vmem:[%s640_s1] sm:$0xff]  ;;  %v270_v9 = vld [vmem:[%s640_s1 + $0x10] sm:$0xff]  ;;  %v271_v10 = vld [vmem:[%s640_s1 + $0x18] sm:$0xff] }
   0xe   : > { %288 = vperm.xlu1 %529, %v274_v1   ;;  %278 = vperm.xlu0 %528, %v272_v2   ;;  %s238_s23 = scalar_lea.vmem %s639_s0, %s489_s20  ;;  %v275_v11 = vld [vmem:[%s641_s2 + $0x18] sm:$0xff]  ;;  %v273_v12 = vld [vmem:[%s641_s2 + $0x8] sm:$0xff]  ;;  %s262_s11 = scalar_lea.vmem %s642_s3, %s489_s20 }
   0xf   : > { %v267_v3 = vld [vmem:[%s238_s23 + $0x18] sm:$0xff]  ;;  %v266_v4 = vld [vmem:[%s238_s23 + $0x10] sm:$0xff]  ;;  %v265_v5 = vld [vmem:[%s238_s23 + $0x8] sm:$0xff] }
  0x10   : > { %321 = vmatpush.msra.mxu0 %v267_v3  ;;  %491 = vmatpush.msra.mxu1 %v267_v3  ;;  %v264_v6 = vld [vmem:[%s238_s23] sm:$0xff] }
  0x11   : > { %492 = vmatpush.msra.mxu2 %v267_v3  ;;  %493 = vmatpush.msra.mxu3 %v267_v3 }
  0x12   : > { %322 = vmatpush.msra.mxu0 %v266_v4  ;;  %494 = vmatpush.msra.mxu1 %v266_v4 }
  0x13   : > { %495 = vmatpush.msra.mxu2 %v266_v4  ;;  %496 = vmatpush.msra.mxu3 %v266_v4 }
  0x14   : > { %323 = vmatpush.msra.mxu0 %v265_v5  ;;  %497 = vmatpush.msra.mxu1 %v265_v5 }
  0x15   : > { %498 = vmatpush.msra.mxu2 %v265_v5  ;;  %499 = vmatpush.msra.mxu3 %v265_v5 }
  0x16   : > { %324 = vmatpush.msra.mxu0 %v264_v6  ;;  %500 = vmatpush.msra.mxu1 %v264_v6 }
  0x17   : > { %501 = vmatpush.msra.mxu2 %v264_v6  ;;  %502 = vmatpush.msra.mxu3 %v264_v6 }
  0x18   : > { %483 = vmatmul.msk.f32.vlgmr.msra.gmra.mxu0 %vm296_vm0, %v268_v7  ;;  %484 = vmatmul.msk.f32.vlgmr.msra.gmra.mxu1 %vm296_vm0, %v269_v8 }
  0x19   : > { %485 = vmatmul.msk.f32.vlgmr.msra.gmra.mxu2 %vm296_vm0, %v270_v9  ;;  %486 = vmatmul.msk.f32.vlgmr.msra.gmra.mxu3 %vm296_vm0, %v271_v10 }
  0x1a   : > { %293 = vperm.xlu1 %529, %v275_v11   ;;  %283 = vperm.xlu0 %528, %v273_v12  }
  0x80   : > { %v279_v13 = vpop.permute.xlu0 %278  ;;  %v289_v14 = vpop.permute.xlu1 %288 }
  0x8c   : > { %v284_v15 = vpop.permute.xlu0 %283  ;;  %v294_v20 = vpop.permute.xlu1 %293 }
  0x95   : > { %v326_v16 = vpop.f32.mrf.mxu0  ;;  %v329_v17 = vpop.f32.mrf.mxu1 }
  0x96   : > { %v327_v18 = vadd.f32 %v326_v16, %v279_v13  ;;  %v330_v19 = vadd.f32 %v329_v17, %v284_v15 }
  0x98   : > { %338 = vst [vmem:[%s262_s11] sm:$0xff] %v327_v18 }
  0x99   : > { %339 = vst [vmem:[%s262_s11 + $0x8] sm:$0xff] %v330_v19 }
  0x9c   : > { %v332_v21 = vpop.f32.mrf.mxu2  ;;  %v335_v22 = vpop.f32.mrf.mxu3 }
  0x9d   : > { %v333_v23 = vadd.f32 %v332_v21, %v289_v14  ;;  %v336_v24 = vadd.f32 %v335_v22, %v294_v20 }
  0x9f   : > { %340 = vst [vmem:[%s262_s11 + $0x10] sm:$0xff] %v333_v23 }
  0xa0   : > { %341 = vst [vmem:[%s262_s11 + $0x18] sm:$0xff] %v336_v24 }
  0xa1 PF: > { %s13_s14 = sadd.s32 1, %s552_s14   ;;  %s643_s12 = smov %s548_s13 }
  0xa2   : > { %p10_p5 = scmp.ge.s32.totalorder %s13_s14, 4   ;;  %s644_s13 = smov %s646_s15 }
  0xa4   :  { %12 = sbr.rel (!%p10_p5) target bundleno = 2 (0x2), region = 68 }

</bundles_post_ra>
